<compile_context>
chip_gen: v7x
topology: tpu7x:2x2x1
jax: 0.10.0
libtpu: 0.0.40
codegen_flags: <defaults>
</compile_context>

<pallas_src>
import functools

import jax
import jax.numpy as jnp
from jax.experimental import pallas as pl
from jax.experimental.pallas import tpu as pltpu


def _pick_block(dim, unit, cap):
    """Tile length along one axis.

    Returns the full dim when dim < unit, otherwise a multiple of `unit`
    that is <= min(dim, cap).  Boundary (ragged) tiles are handled by the
    pl.cdiv grids + clipped DMAs, so no wrapper-side padding is needed.
    """
    if dim < unit:
        return dim
    cap = max(unit, (cap // unit) * unit)
    return min(cap, (dim // unit) * unit)


def _is_v7x():
    try:
        return "v7" in jax.devices()[0].device_kind.lower()
    except Exception:
        return False


def _x_block_spec(block_shape, index_map, extra_buffer):
    """BlockSpec for the large x input; 3-deep pipeline on v7x only."""
    if extra_buffer:
        try:
            return pl.BlockSpec(block_shape, index_map,
                                pipeline_mode=pl.Buffered(3))
        except Exception:
            pass
    return pl.BlockSpec(block_shape, index_map)


# ---------------------------------------------------------------------------
# Kernel 1: tiled global-average-pool (sum over the spatial axis).
#   grid = (row blocks [parallel], spatial blocks [arbitrary, innermost])
#   f32 accumulator in VMEM scratch; ragged spatial tail masked in-kernel.
# ---------------------------------------------------------------------------
def _pool_kernel(x_ref, out_ref, acc_ref, *, hw):
    i = pl.program_id(1)

    @pl.when(i == 0)
    def _():
        acc_ref[...] = jnp.zeros_like(acc_ref)

    x = x_ref[...].astype(jnp.float32)                     # (TR, THW)
    thw = x.shape[-1]
    if hw % thw != 0:
        # Ragged last spatial tile: zero out-of-range lanes before reducing.
        col = i * thw + jax.lax.broadcasted_iota(jnp.int32, x.shape, 1)
        x = jnp.where(col < hw, x, 0.0)
    acc_ref[...] += jnp.sum(x, axis=-1, keepdims=True)     # (TR, 1)

    @pl.when(i == pl.num_programs(1) - 1)
    def _():
        out_ref[...] = acc_ref[...]


# ---------------------------------------------------------------------------
# Kernel 2: per-pixel max over k affine branches.
#   out[r, s] = max_j ( x[r, s] * a[r, j] + b[r, j] )
#   coef_ref holds [slopes | intercepts] per (batch, channel) row: (TR, 2k).
#   The coef block index is constant along the inner spatial grid axis, so
#   Pallas skips its re-DMA after the first spatial step of each row block.
# ---------------------------------------------------------------------------
def _dyrelu_kernel(x_ref, coef_ref, o_ref, *, k):
    x = x_ref[...].astype(jnp.float32)                     # (TR, TW)
    coef = coef_ref[...]                                   # (TR, 2k) f32
    res = x * coef[:, 0:1] + coef[:, k:k + 1]
    for j in range(1, k):
        res = jnp.maximum(res, x * coef[:, j:j + 1] + coef[:, k + j:k + j + 1])
    o_ref[...] = res.astype(o_ref.dtype)


def dyrelu_b(x, params, *, k=2):
    """Pallas implementation of DyReLUB.forward (conv_type='2d')."""
    B, C, H, W = x.shape
    HW = H * W
    BC = B * C
    itemsize = jnp.dtype(x.dtype).itemsize
    lane_cap = 2048 if itemsize <= 2 else 1024             # ~2 MiB per buffer
    v7x = _is_v7x()
    vmem_limit = 32 * 1024 * 1024

    x2 = x.reshape(BC, HW)          # metadata-only reshape, native dtype

    # ---------------- Kernel 1: tiled global-average-pool -------------------
    THW = _pick_block(HW, 128, lane_cap)
    per_buf = 2 * 1024 * 1024
    row_cap = max(8, per_buf // max(1, THW * itemsize))
    TR1 = _pick_block(BC, 8, row_cap)

    pooled = pl.pallas_call(
        functools.partial(_pool_kernel, hw=HW),
        out_shape=jax.ShapeDtypeStruct((BC, 1), jnp.float32),
        grid=(pl.cdiv(BC, TR1), pl.cdiv(HW, THW)),
        in_specs=[_x_block_spec((TR1, THW), lambda r, i: (r, i), v7x)],
        out_specs=pl.BlockSpec((TR1, 1), lambda r, i: (r, 0)),
        scratch_shapes=[pltpu.VMEM((TR1, 1), jnp.float32)],
        compiler_params=pltpu.CompilerParams(
            dimension_semantics=("parallel", "arbitrary"),
            vmem_limit_bytes=vmem_limit),
    )(x2)

    # ------------- tiny coefficient MLP in plain JAX (per perf review) ------
    # fc1 -> ReLU -> fc2 -> 2*sigmoid-1 -> fold lambdas / init_v on (B, C)
    # pooled means; keeping it out of the kernel frees VMEM for the x tiles.
    theta = pooled.reshape(B, C) * (1.0 / HW)
    w1 = params["w1"].astype(jnp.float32)
    b1 = params["b1"].astype(jnp.float32)
    w2 = params["w2"].astype(jnp.float32)
    b2 = params["b2"].astype(jnp.float32)
    h = jnp.maximum(theta @ w1.T + b1, 0.0)
    t = 2.0 * jax.nn.sigmoid(h @ w2.T + b2) - 1.0
    rc = (t.reshape(B, C, 2 * k) * params["lambdas"].astype(jnp.float32)
          + params["init_v"].astype(jnp.float32))
    coef2 = rc.reshape(BC, 2 * k)                          # [slopes | intercepts]

    # ---------------- Kernel 2: elementwise dynamic ReLU ---------------------
    TW = _pick_block(HW, 128, lane_cap)
    TR = _pick_block(BC, 8, 512)

    out = pl.pallas_call(
        functools.partial(_dyrelu_kernel, k=k),
        out_shape=jax.ShapeDtypeStruct((BC, HW), x.dtype),
        grid=(pl.cdiv(BC, TR), pl.cdiv(HW, TW)),
        in_specs=[
            _x_block_spec((TR, TW), lambda r, s: (r, s), v7x),
            pl.BlockSpec((TR, 2 * k), lambda r, s: (r, 0)),
        ],
        out_specs=pl.BlockSpec((TR, TW), lambda r, s: (r, s)),
        compiler_params=pltpu.CompilerParams(
            dimension_semantics=("parallel", "parallel"),
            vmem_limit_bytes=vmem_limit),
    )(x2, coef2)

    return out.reshape(B, C, H, W)


# ---------------------------------------------------------------------------
# Pure-JAX reference (mirrors the PyTorch forward exactly) for verification.
# ---------------------------------------------------------------------------
def dyrelu_b_ref(x, params, k=2):
    theta = jnp.mean(jnp.mean(x, axis=-1), axis=-1)                       # (B, C)
    h = jax.nn.relu(theta @ params["w1"].T + params["b1"])
    t = 2.0 * jax.nn.sigmoid(h @ params["w2"].T + params["b2"]) - 1.0
    B, C = x.shape[0], x.shape[1]
    rc = t.reshape(B, C, 2 * k) * params["lambdas"] + params["init_v"]
    x_perm = jnp.transpose(x, (2, 3, 0, 1))[..., None]                    # (H,W,B,C,1)
    out = x_perm * rc[:, :, :k] + rc[:, :, k:]
    return jnp.transpose(jnp.max(out, axis=-1), (2, 3, 0, 1))             # (B,C,H,W)


if __name__ == "__main__":
    B, C, H, W = 2, 8, 16, 16
    reduction, k = 4, 2
    Cr = C // reduction

    key = jax.random.PRNGKey(0)
    ks = jax.random.split(key, 5)
    x = jax.random.normal(ks[0], (B, C, H, W), jnp.float32)

    # deterministic parameter init (matches nn.Linear's uniform(-1/sqrt(fan_in), ..))
    lim1 = 1.0 / (C ** 0.5)
    lim2 = 1.0 / (Cr ** 0.5)
    params = dict(
        w1=jax.random.uniform(ks[1], (Cr, C), jnp.float32, -lim1, lim1),
        b1=jax.random.uniform(ks[2], (Cr,), jnp.float32, -lim1, lim1),
        w2=jax.random.uniform(ks[3], (2 * k * C, Cr), jnp.float32, -lim2, lim2),
        b2=jax.random.uniform(ks[4], (2 * k * C,), jnp.float32, -lim2, lim2),
        lambdas=jnp.array([1.0] * k + [0.5] * k, jnp.float32),
        init_v=jnp.array([1.0] + [0.0] * (2 * k - 1), jnp.float32),
    )

    out = jax.jit(functools.partial(dyrelu_b, k=k))(x, params)
    out = jax.block_until_ready(out)

    ref = dyrelu_b_ref(x, params, k=k)
    assert out.shape == (B, C, H, W)
    assert out.dtype == x.dtype
    assert jnp.allclose(out.astype(jnp.float32), ref, atol=1e-5, rtol=1e-5), float(
        jnp.max(jnp.abs(out.astype(jnp.float32) - ref))
    )
    print("KERNEL_OK")
</pallas_src>

<mosaic_0001>
module attributes {stable_mosaic.version = 11 : i64} {
  func.func @_pool_kernel(%arg0: i32, %arg1: i32, %arg2: memref<16x256xf32, #tpu.memory_space<vmem>>, %arg3: memref<16x1xf32, #tpu.memory_space<vmem>>, %arg4: memref<16x1xf32, #tpu.memory_space<vmem>>) attributes {dimension_semantics = [#tpu.dimension_semantics<parallel>, #tpu.dimension_semantics<arbitrary>], iteration_bounds = array<i64: 1, 1>, scalar_prefetch = 0 : i64, scratch_operands = 1 : i64, tpu.core_type = #tpu.core_type<tc>, window_params = [{transform_indices = @transform_0, window_bounds = array<i64: 16, 256>}, {transform_indices = @transform_1, window_bounds = array<i64: 16, 1>}]} {
    %c0_i32 = arith.constant 0 : i32
    %0 = arith.cmpi eq, %arg1, %c0_i32 : i32
    %1 = arith.extui %0 : i1 to i32
    %c0_i32_0 = arith.constant 0 : i32
    %2 = arith.cmpi ne, %1, %c0_i32_0 : i32
    scf.if %2 {
      %cst_8 = arith.constant 0.000000e+00 : f32
      %12 = vector.broadcast %cst_8 : f32 to vector<16x1xf32>
      %c0_9 = arith.constant 0 : index
      %c0_10 = arith.constant 0 : index
      %13 = vector.load %arg4[%c0_9, %c0_10] : memref<16x1xf32, #tpu.memory_space<vmem>>, vector<16x1xf32>
      tpu.vector_store %arg4[%c0_9, %c0_10], %12 {strides = array<i32>} : memref<16x1xf32, #tpu.memory_space<vmem>>, vector<16x1xf32>,
    } else {
    }
    %c0 = arith.constant 0 : index
    %c0_1 = arith.constant 0 : index
    %3 = vector.load %arg2[%c0, %c0_1] : memref<16x256xf32, #tpu.memory_space<vmem>>, vector<16x256xf32>
    %c0_2 = arith.constant 0 : index
    %c0_3 = arith.constant 0 : index
    %4 = vector.load %arg4[%c0_2, %c0_3] : memref<16x1xf32, #tpu.memory_space<vmem>>, vector<16x1xf32>
    %cst = arith.constant dense<0.000000e+00> : vector<16xf32>
    %5 = vector.multi_reduction <add>, %3, %cst [1] : vector<16x256xf32> to vector<16xf32>
    %6 = vector.shape_cast %5 : vector<16xf32> to vector<16x1xf32>
    %7 = arith.addf %4, %6 : vector<16x1xf32>
    %c0_4 = arith.constant 0 : index
    %c0_5 = arith.constant 0 : index
    %8 = vector.load %arg4[%c0_4, %c0_5] : memref<16x1xf32, #tpu.memory_space<vmem>>, vector<16x1xf32>
    tpu.vector_store %arg4[%c0_4, %c0_5], %7 {strides = array<i32>} : memref<16x1xf32, #tpu.memory_space<vmem>>, vector<16x1xf32>,
    %c0_i32_6 = arith.constant 0 : i32
    %9 = arith.cmpi eq, %arg1, %c0_i32_6 : i32
    %10 = arith.extui %9 : i1 to i32
    %c0_i32_7 = arith.constant 0 : i32
    %11 = arith.cmpi ne, %10, %c0_i32_7 : i32
    scf.if %11 {
      %c0_8 = arith.constant 0 : index
      %c0_9 = arith.constant 0 : index
      %12 = vector.load %arg4[%c0_8, %c0_9] : memref<16x1xf32, #tpu.memory_space<vmem>>, vector<16x1xf32>
      %c0_10 = arith.constant 0 : index
      %c0_11 = arith.constant 0 : index
      %13 = vector.load %arg3[%c0_10, %c0_11] : memref<16x1xf32, #tpu.memory_space<vmem>>, vector<16x1xf32>
      tpu.vector_store %arg3[%c0_10, %c0_11], %12 {strides = array<i32>} : memref<16x1xf32, #tpu.memory_space<vmem>>, vector<16x1xf32>,
    } else {
    }
    return
  }
  func.func @transform_0(%arg0: i32, %arg1: i32) -> (i32, i32) {
    %c0_i32 = arith.constant 0 : i32
    return %arg0, %arg1 : i32, i32
  }
  func.func @transform_1(%arg0: i32, %arg1: i32) -> (i32, i32) {
    %c0_i32 = arith.constant 0 : i32
    %c0_i32_0 = arith.constant 0 : i32
    return %arg0, %c0_i32 : i32, i32
  }
}

module attributes {stable_mosaic.version = 11 : i64} {
  func.func @_dyrelu_kernel(%arg0: i32, %arg1: i32, %arg2: memref<16x256xf32, #tpu.memory_space<vmem>>, %arg3: memref<16x4xf32, #tpu.memory_space<vmem>>, %arg4: memref<16x256xf32, #tpu.memory_space<vmem>>) attributes {dimension_semantics = [#tpu.dimension_semantics<parallel>, #tpu.dimension_semantics<parallel>], iteration_bounds = array<i64: 1, 1>, scalar_prefetch = 0 : i64, scratch_operands = 0 : i64, tpu.core_type = #tpu.core_type<tc>, window_params = [{transform_indices = @transform_0, window_bounds = array<i64: 16, 256>}, {transform_indices = @transform_1, window_bounds = array<i64: 16, 4>}, {transform_indices = @transform_2, window_bounds = array<i64: 16, 256>}]} {
    %c0 = arith.constant 0 : index
    %c0_0 = arith.constant 0 : index
    %0 = vector.load %arg2[%c0, %c0_0] : memref<16x256xf32, #tpu.memory_space<vmem>>, vector<16x256xf32>
    %c0_1 = arith.constant 0 : index
    %c0_2 = arith.constant 0 : index
    %1 = vector.load %arg3[%c0_1, %c0_2] : memref<16x4xf32, #tpu.memory_space<vmem>>, vector<16x4xf32>
    %2 = vector.extract_strided_slice %1 {offsets = [0, 0], sizes = [16, 1], strides = [1, 1]} : vector<16x4xf32> to vector<16x1xf32>
    %3 = vector.broadcast %2 : vector<16x1xf32> to vector<16x256xf32>
    %4 = arith.mulf %0, %3 : vector<16x256xf32>
    %5 = vector.extract_strided_slice %1 {offsets = [0, 2], sizes = [16, 1], strides = [1, 1]} : vector<16x4xf32> to vector<16x1xf32>
    %6 = vector.broadcast %5 : vector<16x1xf32> to vector<16x256xf32>
    %7 = arith.addf %4, %6 : vector<16x256xf32>
    %8 = vector.extract_strided_slice %1 {offsets = [0, 1], sizes = [16, 1], strides = [1, 1]} : vector<16x4xf32> to vector<16x1xf32>
    %9 = vector.broadcast %8 : vector<16x1xf32> to vector<16x256xf32>
    %10 = arith.mulf %0, %9 : vector<16x256xf32>
    %11 = vector.extract_strided_slice %1 {offsets = [0, 3], sizes = [16, 1], strides = [1, 1]} : vector<16x4xf32> to vector<16x1xf32>
    %12 = vector.broadcast %11 : vector<16x1xf32> to vector<16x256xf32>
    %13 = arith.addf %10, %12 : vector<16x256xf32>
    %14 = arith.maximumf %7, %13 : vector<16x256xf32>
    %c0_3 = arith.constant 0 : index
    %c0_4 = arith.constant 0 : index
    %15 = vector.load %arg4[%c0_3, %c0_4] : memref<16x256xf32, #tpu.memory_space<vmem>>, vector<16x256xf32>
    tpu.vector_store %arg4[%c0_3, %c0_4], %14 {strides = array<i32>} : memref<16x256xf32, #tpu.memory_space<vmem>>, vector<16x256xf32>,
    return
  }
  func.func @transform_0(%arg0: i32, %arg1: i32) -> (i32, i32) {
    %c0_i32 = arith.constant 0 : i32
    return %arg0, %arg1 : i32, i32
  }
  func.func @transform_1(%arg0: i32, %arg1: i32) -> (i32, i32) {
    %c0_i32 = arith.constant 0 : i32
    %c0_i32_0 = arith.constant 0 : i32
    return %arg0, %c0_i32 : i32, i32
  }
  func.func @transform_2(%arg0: i32, %arg1: i32) -> (i32, i32) {
    %c0_i32 = arith.constant 0 : i32
    return %arg0, %arg1 : i32, i32
  }
}

</mosaic_0001>

<bundles_post_ra>
// kernel: dyrelu_b.2
= control target key start
LH: loop header
LB: loop body
LE: loop exit
PB: predicated region body
PF: predicated region fallthrough
CT: control target
= control target key end

     0   :  { %vm12_vm0 = vcmask 7168   ;;  %v44_v3 = vmov 0.0   ;;  %s79_s0 = inlined_call_operand.vmem [shape: f32[16,256], index: 0, kind: input, shape index: {}]   ;;  %s80_s1 = inlined_call_operand.vmem [shape: f32[16,1], index: 1, kind: output, shape index: {}]  }
   0x1   :  { %v15_v0 = vld [vmem:[%s79_s0] sm:$0xff]  ;;  %v16_v1 = vld [vmem:[%s79_s0 + $0x8] sm:$0xff]  ;;  %v17_v2 = vld [vmem:[%s79_s0 + $0x10] sm:$0xff]  ;;  %13 = vst.msk [vmem:[#allocation2] sm:$0xff] %vm12_vm0, %v44_v3 }
   0x2   :  { %14 = vst.msk [vmem:[#allocation2 + $0x8] sm:$0xff] %vm12_vm0, %v44_v3  ;;  %v21_v4 = vadd.f32 %v16_v1, %v15_v0  ;;  %v18_v5 = vld [vmem:[%s79_s0 + $0x18] sm:$0xff] }
   0x3   :  { %v24_v6 = vadd.f32 %v18_v5, %v17_v2 }
   0x4   :  { %22 = vadd.xlane.f32.xlu0 %v21_v4 }
   0x8   :  { %25 = vadd.xlane.f32.xlu0 %v24_v6  ;;  %v19_v7 = vld [vmem:[#allocation2] sm:$0xff] }
   0x9   :  { %v20_v10 = vld [vmem:[#allocation2 + $0x8] sm:$0xff] }
  0x91   :  { %v23_v8 = vpop.xlane.xlu0 %22 }
  0x92   :  { %v27_v9 = vadd.f32 %v23_v8, %v19_v7 }
  0x94   :  { %30 = vst.msk [vmem:[#allocation2] sm:$0xff] %vm12_vm0, %v27_v9 }
  0x95   :  { %v26_v11 = vpop.xlane.xlu0 %25 }
  0x96   :  { %v28_v12 = vadd.f32 %v26_v11, %v20_v10 }
  0x98   :  { %31 = vst.msk [vmem:[#allocation2 + $0x8] sm:$0xff] %vm12_vm0, %v28_v12 }
  0x9b   :  { %v35_v13 = vld [vmem:[#allocation2] sm:$0xff] }
  0x9c   :  { %37 = vst.msk [vmem:[%s80_s1] sm:$0xff] %vm12_vm0, %v35_v13 }
  0x9f   :  { %v36_v14 = vld [vmem:[#allocation2 + $0x8] sm:$0xff] }
  0xa0   :  { %38 = vst.msk [vmem:[%s80_s1 + $0x8] sm:$0xff] %vm12_vm0, %v36_v14 }

// kernel: dyrelu_b.3
= control target key start
LH: loop header
LB: loop body
LE: loop exit
PB: predicated region body
PF: predicated region fallthrough
CT: control target
= control target key end

     0   :  { %v89_v0 = vmov 1   ;;  %v90_v1 = vmov 0   ;;  %v91_v4 = vmov 2   ;;  %v92_v5 = vmov 3   ;;  %s138_s1 = inlined_call_operand.vmem [shape: f32[16,4], index: 1, kind: input, shape index: {}]   ;;  %s139_s0 = inlined_call_operand.vmem [shape: f32[16,256], index: 0, kind: input, shape index: {}]   ;;  %s140_s2 = inlined_call_operand.vmem [shape: f32[16,256], index: 2, kind: output, shape index: {}]  }
   0x1   :  { %84 = vset.pattern.permute.xlu1 %v89_v0  ;;  %83 = vset.pattern.permute.xlu0 %v90_v1  ;;  %v15_v2 = vld [vmem:[%s138_s1] sm:$0xff]  ;;  %v16_v3 = vld [vmem:[%s138_s1 + $0x8] sm:$0xff]  ;;  %v13_v12 = vld [vmem:[%s139_s0 + $0x10] sm:$0xff] }
   0x2   :  { %44 = vperm.xlu1 %84, %v15_v2   ;;  %19 = vperm.xlu0 %83, %v15_v2   ;;  %v11_v10 = vld [vmem:[%s139_s0] sm:$0xff]  ;;  %v12_v11 = vld [vmem:[%s139_s0 + $0x8] sm:$0xff]  ;;  %v14_v13 = vld [vmem:[%s139_s0 + $0x18] sm:$0xff] }
   0x6   :  { %48 = vperm.xlu1 %84, %v16_v3   ;;  %24 = vperm.xlu0 %83, %v16_v3  }
   0xa   :  { %86 = vset.pattern.permute.xlu1 %v91_v4  ;;  %85 = vset.pattern.permute.xlu0 %v91_v4 }
   0xb   :  { %36 = vperm.xlu1 %86, %v16_v3   ;;  %32 = vperm.xlu0 %85, %v15_v2  }
   0xf   :  { %87 = vset.pattern.permute.xlu1 %v92_v5  ;;  %88 = vset.pattern.permute.xlu0 %v92_v5 }
  0x10   :  { %56 = vperm.xlu1 %87, %v15_v2   ;;  %60 = vperm.xlu0 %88, %v16_v3  }
  0x81   :  { %v45_v6 = vpop.permute.xlu1 %44  ;;  %v20_v7 = vpop.permute.xlu0 %19 }
  0x82   :  { %v27_v16 = vmul.f32 %v20_v7, %v11_v10  ;;  %v28_v17 = vmul.f32 %v20_v7, %v12_v11  ;;  %v51_v20 = vmul.f32 %v45_v6, %v11_v10  ;;  %v52_v21 = vmul.f32 %v45_v6, %v12_v11 }
  0x85   :  { %v49_v8 = vpop.permute.xlu1 %48  ;;  %v25_v9 = vpop.permute.xlu0 %24 }
  0x86   :  { %v29_v18 = vmul.f32 %v25_v9, %v13_v12  ;;  %v30_v19 = vmul.f32 %v25_v9, %v14_v13  ;;  %v53_v22 = vmul.f32 %v49_v8, %v13_v12  ;;  %v54_v23 = vmul.f32 %v49_v8, %v14_v13 }
  0x8a   :  { %v37_v14 = vpop.permute.xlu1 %36  ;;  %v33_v15 = vpop.permute.xlu0 %32 }
  0x8b   :  { %v41_v24 = vadd.f32 %v37_v14, %v29_v18  ;;  %v42_v25 = vadd.f32 %v37_v14, %v30_v19  ;;  %v39_v26 = vadd.f32 %v33_v15, %v27_v16  ;;  %v40_v27 = vadd.f32 %v33_v15, %v28_v17 }
  0x8f   :  { %v57_v28 = vpop.permute.xlu1 %56  ;;  %v61_v29 = vpop.permute.xlu0 %60 }
  0x90   :  { %v63_v30 = vadd.f32 %v57_v28, %v51_v20  ;;  %v64_v31 = vadd.f32 %v57_v28, %v52_v21  ;;  %v65_v32 = vadd.f32 %v61_v29, %v53_v22  ;;  %v66_v33 = vadd.f32 %v61_v29, %v54_v23 }
  0x92   :  { %v67_v34 = vmax.f32 %v39_v26, %v63_v30  ;;  %v68_v35 = vmax.f32 %v40_v27, %v64_v31  ;;  %v69_v36 = vmax.f32 %v41_v24, %v65_v32  ;;  %v70_v37 = vmax.f32 %v42_v25, %v66_v33 }
  0x94   :  { %71 = vst [vmem:[%s140_s2] sm:$0xff] %v67_v34  ;;  %72 = vst [vmem:[%s140_s2 + $0x8] sm:$0xff] %v68_v35 }
  0x95   :  { %73 = vst [vmem:[%s140_s2 + $0x10] sm:$0xff] %v69_v36  ;;  %74 = vst [vmem:[%s140_s2 + $0x18] sm:$0xff] %v70_v37 }

</bundles_post_ra>
